<compile_context>
chip_gen: v7x
topology: tpu7x:2x2x1
jax: 0.10.0
libtpu: 0.0.40
codegen_flags: <defaults>
</compile_context>

<pallas_src>
import functools

import jax
import jax.numpy as jnp
from jax.experimental import pallas as pl
from jax.experimental.pallas import tpu as pltpu


# ----------------------------- Pallas kernel ------------------------------- #
def _bilstm_kernel(emb_ref,                         # (T*Bp, E) time-major, flat
                   wih_f_ref, whh_f_ref, b_f_ref,   # (E,4H) (H,4H) (1,4H)
                   wih_b_ref, whh_b_ref, b_b_ref,   # (E,4H) (H,4H) (1,4H)
                   wfc_ref, bfc_ref,                # (2H,Op) (1,Op)
                   out_ref,                         # (Bp, Op)
                   xproj_ref,                       # scratch (T*Bp, 4H)
                   *, hidden_dim, seq_len, batch_pad):
    H = hidden_dim
    T = seq_len
    B = batch_pad

    # ---- hoisted input projection: one big MXU matmul + one bias add for all
    #      timesteps, off the serial recurrence path ----
    xproj_ref[...] = (jnp.dot(emb_ref[...], wih_f_ref[...],
                              preferred_element_type=jnp.float32)
                      + b_f_ref[...])

    # hoist recurrent weight load out of the loop (JAX does not CSE in loops)
    whh_f = whh_f_ref[...]

    def lstm_cell(gates, c):
        # sigmoid dense over the full (Bp, 4H=128) row (3/4 of lanes need it);
        # tanh only on the g slice and on c_new (EUP is on the serial path).
        sig = jax.nn.sigmoid(gates)
        i = sig[:, 0 * H:1 * H]
        f = sig[:, 1 * H:2 * H]
        o = sig[:, 3 * H:4 * H]
        g = jnp.tanh(gates[:, 2 * H:3 * H])
        c_new = f * c + i * g
        h_new = o * jnp.tanh(c_new)
        return h_new, c_new

    # ---- backward direction: only the hidden emitted at t = T-1 is used,
    #      i.e. a single cell step on x[:, T-1] from zero state.  Done before
    #      the forward loop (independent work, can interleave). ----
    xb = emb_ref[(T - 1) * B:T * B, :]
    gates_b = (jnp.dot(xb, wih_b_ref[...], preferred_element_type=jnp.float32)
               + b_b_ref[...])
    h_bwd, _ = lstm_cell(gates_b, jnp.zeros((B, H), jnp.float32))
    # backward half of fc([h_fwd, h_bwd]) + bias, folded in early
    logits_b = (jnp.dot(h_bwd, wfc_ref[H:2 * H, :],
                        preferred_element_type=jnp.float32)
                + bfc_ref[...])

    # ---- forward direction: full recurrence, state carried in registers.
    #      T is a static Python int -> straight-line unroll, static aligned
    #      slices of the hoisted projection scratch. ----
    h = jnp.zeros((B, H), jnp.float32)
    c = jnp.zeros((B, H), jnp.float32)
    for t in range(T):
        gates = (xproj_ref[t * B:(t + 1) * B, :]
                 + jnp.dot(h, whh_f, preferred_element_type=jnp.float32))
        h, c = lstm_cell(gates, c)

    # ---- fc forward half + sigmoid; output slab is lane-dense (Op = 128)
    #      -> single unmasked vst ----
    logits = (jnp.dot(h, wfc_ref[0:H, :], preferred_element_type=jnp.float32)
              + logits_b)
    out_ref[...] = jax.nn.sigmoid(logits)


def bilstm_forward(token_ids, params, *, hidden_dim):
    """token_ids: (B, T) int32 -> (B, O) float32 probabilities."""
    B, T = token_ids.shape
    E = params["embedding"].shape[1]
    O = params["w_fc"].shape[1]
    H = hidden_dim

    B_pad = max(8, ((B + 7) // 8) * 8)   # fill f32 sublanes (pad rows sliced off below)
    O_pad = 128                          # lane-dense output store

    # Embedding lookup (gather) kept as plain-JAX glue at toy sizes.
    # TODO(synk): for large vocab/seq, fuse the gather into the kernel via
    # scalar-prefetched token ids and time-chunked BlockSpecs.
    emb = jnp.take(params["embedding"], token_ids, axis=0).astype(jnp.float32)  # (B,T,E)
    emb_tbe = jnp.transpose(emb, (1, 0, 2))                                     # (T,B,E)
    emb_tbe = jnp.pad(emb_tbe, ((0, 0), (0, B_pad - B), (0, 0)))                # (T,Bp,E)
    emb_flat = emb_tbe.reshape(T * B_pad, E)                                    # (T*Bp,E)

    # Pad fc weights/bias to a 128-lane output slab (zeros -> sliced off).
    w_fc = jnp.pad(params["w_fc"].astype(jnp.float32), ((0, 0), (0, O_pad - O)))
    b_fc = jnp.pad(params["b_fc"].astype(jnp.float32), ((0, 0), (0, O_pad - O)))

    kernel = functools.partial(_bilstm_kernel, hidden_dim=H, seq_len=T,
                               batch_pad=B_pad)
    vmem_spec = pl.BlockSpec(memory_space=pltpu.MemorySpace.VMEM)

    out_pad = pl.pallas_call(
        kernel,
        out_shape=jax.ShapeDtypeStruct((B_pad, O_pad), jnp.float32),
        in_specs=[vmem_spec] * 9,
        out_specs=vmem_spec,
        scratch_shapes=[
            pltpu.VMEM((T * B_pad, 4 * H), jnp.float32),   # hoisted X @ W_ih_f
        ],
    )(emb_flat,
      params["w_ih_f"], params["w_hh_f"], params["b_f"],
      params["w_ih_b"], params["w_hh_b"], params["b_b"],
      w_fc, b_fc)

    return out_pad[:B, :O]


# --------------------------- pure-JAX reference ----------------------------- #
def bilstm_reference(token_ids, params, *, hidden_dim):
    H = hidden_dim
    emb = jnp.take(params["embedding"], token_ids, axis=0)   # (B, T, E)
    B, T, _ = emb.shape

    def cell(x_t, h, c, wih, whh, b):
        g = x_t @ wih + h @ whh + b
        i = jax.nn.sigmoid(g[:, :H])
        f = jax.nn.sigmoid(g[:, H:2 * H])
        gg = jnp.tanh(g[:, 2 * H:3 * H])
        o = jax.nn.sigmoid(g[:, 3 * H:])
        c = f * c + i * gg
        return o * jnp.tanh(c), c

    h = jnp.zeros((B, H), jnp.float32)
    c = jnp.zeros((B, H), jnp.float32)
    for t in range(T):
        h, c = cell(emb[:, t], h, c,
                    params["w_ih_f"], params["w_hh_f"], params["b_f"])
    zeros_h = jnp.zeros((B, H), jnp.float32)
    hb, _ = cell(emb[:, T - 1], zeros_h, zeros_h,
                 params["w_ih_b"], params["w_hh_b"], params["b_b"])
    feat = jnp.concatenate([h, hb], axis=-1)
    return jax.nn.sigmoid(feat @ params["w_fc"] + params["b_fc"])


# -------------------------------- main ------------------------------------- #
if __name__ == "__main__":
    # Small, self-consistent shapes (module: Embedding -> BiLSTM -> Linear).
    VOCAB = 16
    EMBED = 32        # embed_dim
    HIDDEN = 32       # hidden_dim  -> 4H = 128 (lane friendly)
    OUT = 4           # output_dim
    B, T = 2, 8

    key = jax.random.PRNGKey(0)
    ks = jax.random.split(key, 12)
    scale = 0.1

    def rnd(k, shape):
        return (scale * jax.random.normal(k, shape)).astype(jnp.float32)

    params = {
        # nn.Embedding(vocab_size, embed_dim)  (pretrained=False path)
        "embedding": rnd(ks[0], (VOCAB, EMBED)),
        # forward-direction LSTM weights (stored transposed; gates [i|f|g|o])
        "w_ih_f": rnd(ks[1], (EMBED, 4 * HIDDEN)),
        "w_hh_f": rnd(ks[2], (HIDDEN, 4 * HIDDEN)),
        "b_f": (rnd(ks[3], (4 * HIDDEN,)) + rnd(ks[4], (4 * HIDDEN,)))[None, :],
        # backward-direction LSTM weights
        "w_ih_b": rnd(ks[5], (EMBED, 4 * HIDDEN)),
        "w_hh_b": rnd(ks[6], (HIDDEN, 4 * HIDDEN)),
        "b_b": (rnd(ks[7], (4 * HIDDEN,)) + rnd(ks[8], (4 * HIDDEN,)))[None, :],
        # fc: Linear(2H, output_dim)
        "w_fc": rnd(ks[9], (2 * HIDDEN, OUT)),
        "b_fc": rnd(ks[10], (OUT,))[None, :],
    }

    x = jax.random.randint(ks[11], (B, T), 0, VOCAB, dtype=jnp.int32)

    out = bilstm_forward(x, params, hidden_dim=HIDDEN)
    out = jax.block_until_ready(out)

    ref = bilstm_reference(x, params, hidden_dim=HIDDEN)
    assert out.shape == (B, OUT), out.shape
    assert jnp.allclose(out, ref, atol=1e-5, rtol=1e-5), (out, ref)

    print("KERNEL_OK")
</pallas_src>

<mosaic_0001>
module attributes {stable_mosaic.version = 11 : i64} {
  func.func @_bilstm_kernel(%arg0: memref<64x32xf32, #tpu.memory_space<vmem>>, %arg1: memref<32x128xf32, #tpu.memory_space<vmem>>, %arg2: memref<32x128xf32, #tpu.memory_space<vmem>>, %arg3: memref<1x128xf32, #tpu.memory_space<vmem>>, %arg4: memref<32x128xf32, #tpu.memory_space<vmem>>, %arg5: memref<32x128xf32, #tpu.memory_space<vmem>>, %arg6: memref<1x128xf32, #tpu.memory_space<vmem>>, %arg7: memref<64x128xf32, #tpu.memory_space<vmem>>, %arg8: memref<1x128xf32, #tpu.memory_space<vmem>>, %arg9: memref<8x128xf32, #tpu.memory_space<vmem>>, %arg10: memref<64x128xf32, #tpu.memory_space<vmem>>) attributes {dimension_semantics = [], scalar_prefetch = 0 : i64, scratch_operands = 1 : i64, tpu.core_type = #tpu.core_type<tc>} {
    %c0 = arith.constant 0 : index
    %c0_0 = arith.constant 0 : index
    %0 = vector.load %arg0[%c0, %c0_0] : memref<64x32xf32, #tpu.memory_space<vmem>>, vector<64x32xf32>
    %c0_1 = arith.constant 0 : index
    %c0_2 = arith.constant 0 : index
    %1 = vector.load %arg1[%c0_1, %c0_2] : memref<32x128xf32, #tpu.memory_space<vmem>>, vector<32x128xf32>
    %cst = arith.constant dense<0.000000e+00> : vector<64x128xf32>
    %2 = tpu.matmul %0, %1, %cst {dimension_numbers = #tpu.dot_dimension_numbers<[1], [0], [0], [1], [0, 0, 1, 1], [], []>} : vector<64x32xf32>, vector<32x128xf32>, vector<64x128xf32> -> vector<64x128xf32>
    %c0_3 = arith.constant 0 : index
    %c0_4 = arith.constant 0 : index
    %3 = vector.load %arg3[%c0_3, %c0_4] : memref<1x128xf32, #tpu.memory_space<vmem>>, vector<1x128xf32>
    %4 = vector.broadcast %3 : vector<1x128xf32> to vector<64x128xf32>
    %5 = arith.addf %2, %4 : vector<64x128xf32>
    %c0_5 = arith.constant 0 : index
    %c0_6 = arith.constant 0 : index
    %6 = vector.load %arg10[%c0_5, %c0_6] : memref<64x128xf32, #tpu.memory_space<vmem>>, vector<64x128xf32>
    tpu.vector_store %arg10[%c0_5, %c0_6], %5 {strides = array<i32>} : memref<64x128xf32, #tpu.memory_space<vmem>>, vector<64x128xf32>,
    %c0_7 = arith.constant 0 : index
    %c0_8 = arith.constant 0 : index
    %7 = vector.load %arg2[%c0_7, %c0_8] : memref<32x128xf32, #tpu.memory_space<vmem>>, vector<32x128xf32>
    %c56 = arith.constant 56 : index
    %c0_9 = arith.constant 0 : index
    %8 = vector.load %arg0[%c56, %c0_9] : memref<64x32xf32, #tpu.memory_space<vmem>>, vector<8x32xf32>
    %c0_10 = arith.constant 0 : index
    %c0_11 = arith.constant 0 : index
    %9 = vector.load %arg4[%c0_10, %c0_11] : memref<32x128xf32, #tpu.memory_space<vmem>>, vector<32x128xf32>
    %cst_12 = arith.constant dense<0.000000e+00> : vector<8x128xf32>
    %10 = tpu.matmul %8, %9, %cst_12 {dimension_numbers = #tpu.dot_dimension_numbers<[1], [0], [0], [1], [0, 0, 1, 1], [], []>} : vector<8x32xf32>, vector<32x128xf32>, vector<8x128xf32> -> vector<8x128xf32>
    %c0_13 = arith.constant 0 : index
    %c0_14 = arith.constant 0 : index
    %11 = vector.load %arg6[%c0_13, %c0_14] : memref<1x128xf32, #tpu.memory_space<vmem>>, vector<1x128xf32>
    %12 = vector.broadcast %11 : vector<1x128xf32> to vector<8x128xf32>
    %13 = arith.addf %10, %12 : vector<8x128xf32>
    %cst_15 = arith.constant 0.000000e+00 : f32
    %14 = vector.broadcast %cst_15 : f32 to vector<8x32xf32>
    %15 = arith.negf %13 : vector<8x128xf32>
    %16 = math.exp %15 : vector<8x128xf32>
    %cst_16 = arith.constant 1.000000e+00 : f32
    %17 = vector.broadcast %cst_16 : f32 to vector<8x128xf32>
    %18 = arith.addf %17, %16 : vector<8x128xf32>
    %19 = arith.divf %17, %18 : vector<8x128xf32>
    %20 = vector.extract_strided_slice %19 {offsets = [0, 0], sizes = [8, 32], strides = [1, 1]} : vector<8x128xf32> to vector<8x32xf32>
    %21 = vector.extract_strided_slice %19 {offsets = [0, 32], sizes = [8, 32], strides = [1, 1]} : vector<8x128xf32> to vector<8x32xf32>
    %22 = vector.extract_strided_slice %19 {offsets = [0, 96], sizes = [8, 32], strides = [1, 1]} : vector<8x128xf32> to vector<8x32xf32>
    %23 = vector.extract_strided_slice %13 {offsets = [0, 64], sizes = [8, 32], strides = [1, 1]} : vector<8x128xf32> to vector<8x32xf32>
    %24 = math.tanh %23 : vector<8x32xf32>
    %25 = arith.mulf %21, %14 : vector<8x32xf32>
    %26 = arith.mulf %20, %24 : vector<8x32xf32>
    %27 = arith.addf %25, %26 : vector<8x32xf32>
    %28 = math.tanh %27 : vector<8x32xf32>
    %29 = arith.mulf %22, %28 : vector<8x32xf32>
    %c32 = arith.constant 32 : index
    %c0_17 = arith.constant 0 : index
    %30 = vector.load %arg7[%c32, %c0_17] : memref<64x128xf32, #tpu.memory_space<vmem>>, vector<32x128xf32>
    %cst_18 = arith.constant dense<0.000000e+00> : vector<8x128xf32>
    %31 = tpu.matmul %29, %30, %cst_18 {dimension_numbers = #tpu.dot_dimension_numbers<[1], [0], [0], [1], [0, 0, 1, 1], [], []>} : vector<8x32xf32>, vector<32x128xf32>, vector<8x128xf32> -> vector<8x128xf32>
    %c0_19 = arith.constant 0 : index
    %c0_20 = arith.constant 0 : index
    %32 = vector.load %arg8[%c0_19, %c0_20] : memref<1x128xf32, #tpu.memory_space<vmem>>, vector<1x128xf32>
    %33 = vector.broadcast %32 : vector<1x128xf32> to vector<8x128xf32>
    %34 = arith.addf %31, %33 : vector<8x128xf32>
    %cst_21 = arith.constant 0.000000e+00 : f32
    %35 = vector.broadcast %cst_21 : f32 to vector<8x32xf32>
    %cst_22 = arith.constant 0.000000e+00 : f32
    %36 = vector.broadcast %cst_22 : f32 to vector<8x32xf32>
    %c0_23 = arith.constant 0 : index
    %c0_24 = arith.constant 0 : index
    %37 = vector.load %arg10[%c0_23, %c0_24] : memref<64x128xf32, #tpu.memory_space<vmem>>, vector<8x128xf32>
    %cst_25 = arith.constant dense<0.000000e+00> : vector<8x128xf32>
    %38 = tpu.matmul %35, %7, %cst_25 {dimension_numbers = #tpu.dot_dimension_numbers<[1], [0], [0], [1], [0, 0, 1, 1], [], []>} : vector<8x32xf32>, vector<32x128xf32>, vector<8x128xf32> -> vector<8x128xf32>
    %39 = arith.addf %37, %38 : vector<8x128xf32>
    %40 = arith.negf %39 : vector<8x128xf32>
    %41 = math.exp %40 : vector<8x128xf32>
    %cst_26 = arith.constant 1.000000e+00 : f32
    %42 = vector.broadcast %cst_26 : f32 to vector<8x128xf32>
    %43 = arith.addf %42, %41 : vector<8x128xf32>
    %44 = arith.divf %42, %43 : vector<8x128xf32>
    %45 = vector.extract_strided_slice %44 {offsets = [0, 0], sizes = [8, 32], strides = [1, 1]} : vector<8x128xf32> to vector<8x32xf32>
    %46 = vector.extract_strided_slice %44 {offsets = [0, 32], sizes = [8, 32], strides = [1, 1]} : vector<8x128xf32> to vector<8x32xf32>
    %47 = vector.extract_strided_slice %44 {offsets = [0, 96], sizes = [8, 32], strides = [1, 1]} : vector<8x128xf32> to vector<8x32xf32>
    %48 = vector.extract_strided_slice %39 {offsets = [0, 64], sizes = [8, 32], strides = [1, 1]} : vector<8x128xf32> to vector<8x32xf32>
    %49 = math.tanh %48 : vector<8x32xf32>
    %50 = arith.mulf %46, %36 : vector<8x32xf32>
    %51 = arith.mulf %45, %49 : vector<8x32xf32>
    %52 = arith.addf %50, %51 : vector<8x32xf32>
    %53 = math.tanh %52 : vector<8x32xf32>
    %54 = arith.mulf %47, %53 : vector<8x32xf32>
    %c8 = arith.constant 8 : index
    %c0_27 = arith.constant 0 : index
    %55 = vector.load %arg10[%c8, %c0_27] : memref<64x128xf32, #tpu.memory_space<vmem>>, vector<8x128xf32>
    %cst_28 = arith.constant dense<0.000000e+00> : vector<8x128xf32>
    %56 = tpu.matmul %54, %7, %cst_28 {dimension_numbers = #tpu.dot_dimension_numbers<[1], [0], [0], [1], [0, 0, 1, 1], [], []>} : vector<8x32xf32>, vector<32x128xf32>, vector<8x128xf32> -> vector<8x128xf32>
    %57 = arith.addf %55, %56 : vector<8x128xf32>
    %58 = arith.negf %57 : vector<8x128xf32>
    %59 = math.exp %58 : vector<8x128xf32>
    %cst_29 = arith.constant 1.000000e+00 : f32
    %60 = vector.broadcast %cst_29 : f32 to vector<8x128xf32>
    %61 = arith.addf %60, %59 : vector<8x128xf32>
    %62 = arith.divf %60, %61 : vector<8x128xf32>
    %63 = vector.extract_strided_slice %62 {offsets = [0, 0], sizes = [8, 32], strides = [1, 1]} : vector<8x128xf32> to vector<8x32xf32>
    %64 = vector.extract_strided_slice %62 {offsets = [0, 32], sizes = [8, 32], strides = [1, 1]} : vector<8x128xf32> to vector<8x32xf32>
    %65 = vector.extract_strided_slice %62 {offsets = [0, 96], sizes = [8, 32], strides = [1, 1]} : vector<8x128xf32> to vector<8x32xf32>
    %66 = vector.extract_strided_slice %57 {offsets = [0, 64], sizes = [8, 32], strides = [1, 1]} : vector<8x128xf32> to vector<8x32xf32>
    %67 = math.tanh %66 : vector<8x32xf32>
    %68 = arith.mulf %64, %52 : vector<8x32xf32>
    %69 = arith.mulf %63, %67 : vector<8x32xf32>
    %70 = arith.addf %68, %69 : vector<8x32xf32>
    %71 = math.tanh %70 : vector<8x32xf32>
    %72 = arith.mulf %65, %71 : vector<8x32xf32>
    %c16 = arith.constant 16 : index
    %c0_30 = arith.constant 0 : index
    %73 = vector.load %arg10[%c16, %c0_30] : memref<64x128xf32, #tpu.memory_space<vmem>>, vector<8x128xf32>
    %cst_31 = arith.constant dense<0.000000e+00> : vector<8x128xf32>
    %74 = tpu.matmul %72, %7, %cst_31 {dimension_numbers = #tpu.dot_dimension_numbers<[1], [0], [0], [1], [0, 0, 1, 1], [], []>} : vector<8x32xf32>, vector<32x128xf32>, vector<8x128xf32> -> vector<8x128xf32>
    %75 = arith.addf %73, %74 : vector<8x128xf32>
    %76 = arith.negf %75 : vector<8x128xf32>
    %77 = math.exp %76 : vector<8x128xf32>
    %cst_32 = arith.constant 1.000000e+00 : f32
    %78 = vector.broadcast %cst_32 : f32 to vector<8x128xf32>
    %79 = arith.addf %78, %77 : vector<8x128xf32>
    %80 = arith.divf %78, %79 : vector<8x128xf32>
    %81 = vector.extract_strided_slice %80 {offsets = [0, 0], sizes = [8, 32], strides = [1, 1]} : vector<8x128xf32> to vector<8x32xf32>
    %82 = vector.extract_strided_slice %80 {offsets = [0, 32], sizes = [8, 32], strides = [1, 1]} : vector<8x128xf32> to vector<8x32xf32>
    %83 = vector.extract_strided_slice %80 {offsets = [0, 96], sizes = [8, 32], strides = [1, 1]} : vector<8x128xf32> to vector<8x32xf32>
    %84 = vector.extract_strided_slice %75 {offsets = [0, 64], sizes = [8, 32], strides = [1, 1]} : vector<8x128xf32> to vector<8x32xf32>
    %85 = math.tanh %84 : vector<8x32xf32>
    %86 = arith.mulf %82, %70 : vector<8x32xf32>
    %87 = arith.mulf %81, %85 : vector<8x32xf32>
    %88 = arith.addf %86, %87 : vector<8x32xf32>
    %89 = math.tanh %88 : vector<8x32xf32>
    %90 = arith.mulf %83, %89 : vector<8x32xf32>
    %c24 = arith.constant 24 : index
    %c0_33 = arith.constant 0 : index
    %91 = vector.load %arg10[%c24, %c0_33] : memref<64x128xf32, #tpu.memory_space<vmem>>, vector<8x128xf32>
    %cst_34 = arith.constant dense<0.000000e+00> : vector<8x128xf32>
    %92 = tpu.matmul %90, %7, %cst_34 {dimension_numbers = #tpu.dot_dimension_numbers<[1], [0], [0], [1], [0, 0, 1, 1], [], []>} : vector<8x32xf32>, vector<32x128xf32>, vector<8x128xf32> -> vector<8x128xf32>
    %93 = arith.addf %91, %92 : vector<8x128xf32>
    %94 = arith.negf %93 : vector<8x128xf32>
    %95 = math.exp %94 : vector<8x128xf32>
    %cst_35 = arith.constant 1.000000e+00 : f32
    %96 = vector.broadcast %cst_35 : f32 to vector<8x128xf32>
    %97 = arith.addf %96, %95 : vector<8x128xf32>
    %98 = arith.divf %96, %97 : vector<8x128xf32>
    %99 = vector.extract_strided_slice %98 {offsets = [0, 0], sizes = [8, 32], strides = [1, 1]} : vector<8x128xf32> to vector<8x32xf32>
    %100 = vector.extract_strided_slice %98 {offsets = [0, 32], sizes = [8, 32], strides = [1, 1]} : vector<8x128xf32> to vector<8x32xf32>
    %101 = vector.extract_strided_slice %98 {offsets = [0, 96], sizes = [8, 32], strides = [1, 1]} : vector<8x128xf32> to vector<8x32xf32>
    %102 = vector.extract_strided_slice %93 {offsets = [0, 64], sizes = [8, 32], strides = [1, 1]} : vector<8x128xf32> to vector<8x32xf32>
    %103 = math.tanh %102 : vector<8x32xf32>
    %104 = arith.mulf %100, %88 : vector<8x32xf32>
    %105 = arith.mulf %99, %103 : vector<8x32xf32>
    %106 = arith.addf %104, %105 : vector<8x32xf32>
    %107 = math.tanh %106 : vector<8x32xf32>
    %108 = arith.mulf %101, %107 : vector<8x32xf32>
    %c32_36 = arith.constant 32 : index
    %c0_37 = arith.constant 0 : index
    %109 = vector.load %arg10[%c32_36, %c0_37] : memref<64x128xf32, #tpu.memory_space<vmem>>, vector<8x128xf32>
    %cst_38 = arith.constant dense<0.000000e+00> : vector<8x128xf32>
    %110 = tpu.matmul %108, %7, %cst_38 {dimension_numbers = #tpu.dot_dimension_numbers<[1], [0], [0], [1], [0, 0, 1, 1], [], []>} : vector<8x32xf32>, vector<32x128xf32>, vector<8x128xf32> -> vector<8x128xf32>
    %111 = arith.addf %109, %110 : vector<8x128xf32>
    %112 = arith.negf %111 : vector<8x128xf32>
    %113 = math.exp %112 : vector<8x128xf32>
    %cst_39 = arith.constant 1.000000e+00 : f32
    %114 = vector.broadcast %cst_39 : f32 to vector<8x128xf32>
    %115 = arith.addf %114, %113 : vector<8x128xf32>
    %116 = arith.divf %114, %115 : vector<8x128xf32>
    %117 = vector.extract_strided_slice %116 {offsets = [0, 0], sizes = [8, 32], strides = [1, 1]} : vector<8x128xf32> to vector<8x32xf32>
    %118 = vector.extract_strided_slice %116 {offsets = [0, 32], sizes = [8, 32], strides = [1, 1]} : vector<8x128xf32> to vector<8x32xf32>
    %119 = vector.extract_strided_slice %116 {offsets = [0, 96], sizes = [8, 32], strides = [1, 1]} : vector<8x128xf32> to vector<8x32xf32>
    %120 = vector.extract_strided_slice %111 {offsets = [0, 64], sizes = [8, 32], strides = [1, 1]} : vector<8x128xf32> to vector<8x32xf32>
    %121 = math.tanh %120 : vector<8x32xf32>
    %122 = arith.mulf %118, %106 : vector<8x32xf32>
    %123 = arith.mulf %117, %121 : vector<8x32xf32>
    %124 = arith.addf %122, %123 : vector<8x32xf32>
    %125 = math.tanh %124 : vector<8x32xf32>
    %126 = arith.mulf %119, %125 : vector<8x32xf32>
    %c40 = arith.constant 40 : index
    %c0_40 = arith.constant 0 : index
    %127 = vector.load %arg10[%c40, %c0_40] : memref<64x128xf32, #tpu.memory_space<vmem>>, vector<8x128xf32>
    %cst_41 = arith.constant dense<0.000000e+00> : vector<8x128xf32>
    %128 = tpu.matmul %126, %7, %cst_41 {dimension_numbers = #tpu.dot_dimension_numbers<[1], [0], [0], [1], [0, 0, 1, 1], [], []>} : vector<8x32xf32>, vector<32x128xf32>, vector<8x128xf32> -> vector<8x128xf32>
    %129 = arith.addf %127, %128 : vector<8x128xf32>
    %130 = arith.negf %129 : vector<8x128xf32>
    %131 = math.exp %130 : vector<8x128xf32>
    %cst_42 = arith.constant 1.000000e+00 : f32
    %132 = vector.broadcast %cst_42 : f32 to vector<8x128xf32>
    %133 = arith.addf %132, %131 : vector<8x128xf32>
    %134 = arith.divf %132, %133 : vector<8x128xf32>
    %135 = vector.extract_strided_slice %134 {offsets = [0, 0], sizes = [8, 32], strides = [1, 1]} : vector<8x128xf32> to vector<8x32xf32>
    %136 = vector.extract_strided_slice %134 {offsets = [0, 32], sizes = [8, 32], strides = [1, 1]} : vector<8x128xf32> to vector<8x32xf32>
    %137 = vector.extract_strided_slice %134 {offsets = [0, 96], sizes = [8, 32], strides = [1, 1]} : vector<8x128xf32> to vector<8x32xf32>
    %138 = vector.extract_strided_slice %129 {offsets = [0, 64], sizes = [8, 32], strides = [1, 1]} : vector<8x128xf32> to vector<8x32xf32>
    %139 = math.tanh %138 : vector<8x32xf32>
    %140 = arith.mulf %136, %124 : vector<8x32xf32>
    %141 = arith.mulf %135, %139 : vector<8x32xf32>
    %142 = arith.addf %140, %141 : vector<8x32xf32>
    %143 = math.tanh %142 : vector<8x32xf32>
    %144 = arith.mulf %137, %143 : vector<8x32xf32>
    %c48 = arith.constant 48 : index
    %c0_43 = arith.constant 0 : index
    %145 = vector.load %arg10[%c48, %c0_43] : memref<64x128xf32, #tpu.memory_space<vmem>>, vector<8x128xf32>
    %cst_44 = arith.constant dense<0.000000e+00> : vector<8x128xf32>
    %146 = tpu.matmul %144, %7, %cst_44 {dimension_numbers = #tpu.dot_dimension_numbers<[1], [0], [0], [1], [0, 0, 1, 1], [], []>} : vector<8x32xf32>, vector<32x128xf32>, vector<8x128xf32> -> vector<8x128xf32>
    %147 = arith.addf %145, %146 : vector<8x128xf32>
    %148 = arith.negf %147 : vector<8x128xf32>
    %149 = math.exp %148 : vector<8x128xf32>
    %cst_45 = arith.constant 1.000000e+00 : f32
    %150 = vector.broadcast %cst_45 : f32 to vector<8x128xf32>
    %151 = arith.addf %150, %149 : vector<8x128xf32>
    %152 = arith.divf %150, %151 : vector<8x128xf32>
    %153 = vector.extract_strided_slice %152 {offsets = [0, 0], sizes = [8, 32], strides = [1, 1]} : vector<8x128xf32> to vector<8x32xf32>
    %154 = vector.extract_strided_slice %152 {offsets = [0, 32], sizes = [8, 32], strides = [1, 1]} : vector<8x128xf32> to vector<8x32xf32>
    %155 = vector.extract_strided_slice %152 {offsets = [0, 96], sizes = [8, 32], strides = [1, 1]} : vector<8x128xf32> to vector<8x32xf32>
    %156 = vector.extract_strided_slice %147 {offsets = [0, 64], sizes = [8, 32], strides = [1, 1]} : vector<8x128xf32> to vector<8x32xf32>
    %157 = math.tanh %156 : vector<8x32xf32>
    %158 = arith.mulf %154, %142 : vector<8x32xf32>
    %159 = arith.mulf %153, %157 : vector<8x32xf32>
    %160 = arith.addf %158, %159 : vector<8x32xf32>
    %161 = math.tanh %160 : vector<8x32xf32>
    %162 = arith.mulf %155, %161 : vector<8x32xf32>
    %c56_46 = arith.constant 56 : index
    %c0_47 = arith.constant 0 : index
    %163 = vector.load %arg10[%c56_46, %c0_47] : memref<64x128xf32, #tpu.memory_space<vmem>>, vector<8x128xf32>
    %cst_48 = arith.constant dense<0.000000e+00> : vector<8x128xf32>
    %164 = tpu.matmul %162, %7, %cst_48 {dimension_numbers = #tpu.dot_dimension_numbers<[1], [0], [0], [1], [0, 0, 1, 1], [], []>} : vector<8x32xf32>, vector<32x128xf32>, vector<8x128xf32> -> vector<8x128xf32>
    %165 = arith.addf %163, %164 : vector<8x128xf32>
    %166 = arith.negf %165 : vector<8x128xf32>
    %167 = math.exp %166 : vector<8x128xf32>
    %cst_49 = arith.constant 1.000000e+00 : f32
    %168 = vector.broadcast %cst_49 : f32 to vector<8x128xf32>
    %169 = arith.addf %168, %167 : vector<8x128xf32>
    %170 = arith.divf %168, %169 : vector<8x128xf32>
    %171 = vector.extract_strided_slice %170 {offsets = [0, 0], sizes = [8, 32], strides = [1, 1]} : vector<8x128xf32> to vector<8x32xf32>
    %172 = vector.extract_strided_slice %170 {offsets = [0, 32], sizes = [8, 32], strides = [1, 1]} : vector<8x128xf32> to vector<8x32xf32>
    %173 = vector.extract_strided_slice %170 {offsets = [0, 96], sizes = [8, 32], strides = [1, 1]} : vector<8x128xf32> to vector<8x32xf32>
    %174 = vector.extract_strided_slice %165 {offsets = [0, 64], sizes = [8, 32], strides = [1, 1]} : vector<8x128xf32> to vector<8x32xf32>
    %175 = math.tanh %174 : vector<8x32xf32>
    %176 = arith.mulf %172, %160 : vector<8x32xf32>
    %177 = arith.mulf %171, %175 : vector<8x32xf32>
    %178 = arith.addf %176, %177 : vector<8x32xf32>
    %179 = math.tanh %178 : vector<8x32xf32>
    %180 = arith.mulf %173, %179 : vector<8x32xf32>
    %c0_50 = arith.constant 0 : index
    %c0_51 = arith.constant 0 : index
    %181 = vector.load %arg7[%c0_50, %c0_51] : memref<64x128xf32, #tpu.memory_space<vmem>>, vector<32x128xf32>
    %cst_52 = arith.constant dense<0.000000e+00> : vector<8x128xf32>
    %182 = tpu.matmul %180, %181, %cst_52 {dimension_numbers = #tpu.dot_dimension_numbers<[1], [0], [0], [1], [0, 0, 1, 1], [], []>} : vector<8x32xf32>, vector<32x128xf32>, vector<8x128xf32> -> vector<8x128xf32>
    %183 = arith.addf %182, %34 : vector<8x128xf32>
    %184 = arith.negf %183 : vector<8x128xf32>
    %185 = math.exp %184 : vector<8x128xf32>
    %cst_53 = arith.constant 1.000000e+00 : f32
    %186 = vector.broadcast %cst_53 : f32 to vector<8x128xf32>
    %187 = arith.addf %186, %185 : vector<8x128xf32>
    %188 = arith.divf %186, %187 : vector<8x128xf32>
    %c0_54 = arith.constant 0 : index
    %c0_55 = arith.constant 0 : index
    %189 = vector.load %arg9[%c0_54, %c0_55] : memref<8x128xf32, #tpu.memory_space<vmem>>, vector<8x128xf32>
    tpu.vector_store %arg9[%c0_54, %c0_55], %188 {strides = array<i32>} : memref<8x128xf32, #tpu.memory_space<vmem>>, vector<8x128xf32>,
    return
  }
}

</mosaic_0001>

<bundles_post_ra>
// kernel: tpu_custom_call.1
= control target key start
LH: loop header
LB: loop body
LE: loop exit
PB: predicated region body
PF: predicated region fallthrough
CT: control target
= control target key end

     0   :  { %14 = vsyncpa [#allocation4], 0  ;;  %s2169_s0 = inlined_call_operand.vmem [shape: f32[64,32], index: 0, kind: input, shape index: {}]   ;;  %s2170_s1 = inlined_call_operand.vmem [shape: f32[32,128], index: 1, kind: input, shape index: {}]   ;;  %s2171_s2 = inlined_call_operand.hbm [shape: f32[32,128], index: 2, kind: input, shape index: {}]   ;;  %s2172_s3 = inlined_call_operand.vmem [shape: f32[1,128], index: 3, kind: input, shape index: {}]   ;;  %s2173_s4 = inlined_call_operand.hbm [shape: f32[32,128], index: 4, kind: input, shape index: {}]   ;;  %s2174_s5 = inlined_call_operand.hbm [shape: f32[32,128], index: 5, kind: input, shape index: {}]   ;;  %s2175_s6 = inlined_call_operand.vmem [shape: f32[1,128], index: 6, kind: input, shape index: {}]   ;;  %s2176_s7 = inlined_call_operand.vmem [shape: f32[64,128], index: 7, kind: input, shape index: {}]   ;;  %s2177_s8 = inlined_call_operand.vmem [shape: f32[1,128], index: 8, kind: input, shape index: {}]   ;;  %s2178_s9 = inlined_call_operand.hbm [shape: f32[8,128], index: 9, kind: output, shape index: {}]  }
   0x1   :  { %15 = vsyncpa [#allocation7], 0 }
   0x2   :  { %16 = vsyncpa [#allocation5], 0  ;;  %s1835_s30 = smov [#allocation6]   ;;  %s1836_s11 = smov [#allocation3]  }
   0x3   :  { %s40_s10 = sshll.u32 %s1835_s30, 4  ;;  %s26_s12 = sshll.u32 %s1836_s11, 4  ;;  %s41_s10 = int_to_ptr.vmem [resolvable:$true] %s40_s10  ;;  %s1896_s12 = int_to_ptr.vmem [resolvable:$true] %s26_s12 }
   0x4   :  { %s1741_s15 = scalar_lea.hbm %s2173_s4, 512 }
   0x5   :  { %p1742_p0 = scmp.ne.s32.totalorder %s2173_s4, %s1741_s15  ;;  %p1745_p1 = scmp.lt.u32.totalorder %s1741_s15, %s2173_s4 }
   0x7   :  { %p1747_p2 = pnand %p1745_p1, %p1742_p0 }
   0x9   :  { %1750 = shalt.err (!%p1747_p2)
}
   0xa   :  { %s1751_s20 = scalar_lea.vmem %s41_s10, 512  ;;  %p1756_p4 = scmp.lt.s32.totalorder %s41_s10, %s41_s10 }
   0xb   :  { %p1752_p3 = scmp.ne.s32.totalorder %s41_s10, %s1751_s20  ;;  %p1757_p5 = scmp.lt.s32.totalorder %s1751_s20, %s1751_s20 }
   0xd   :  { %p1758_p6 = por %p1757_p5, %p1756_p4 }
   0xf   :  { %p1759_p7 = pnand %p1758_p6, %p1752_p3 }
  0x11   :  { %1762 = shalt.err (!%p1759_p7)
}
  0x12   :  { %s1837_s21 = smov 128   ;;  %s1838_s22 = smov 8  }
  0x13   :  { %46 = dma.hbm_to_vmem [thread:$0]  %s2173_s4, 512, %s41_s10, [#allocation7], %s1837_s21, %s1837_s21, %s1838_s22  }
  0x14   :  { %s1763_s27 = scalar_lea.hbm %s2171_s2, 512 }
  0x15   :  { %p1764_p8 = scmp.ne.s32.totalorder %s2171_s2, %s1763_s27  ;;  %p1767_p9 = scmp.lt.u32.totalorder %s1763_s27, %s2171_s2 }
  0x17   :  { %p1769_p10 = pnand %p1767_p9, %p1764_p8 }
  0x19   :  { %1772 = shalt.err (!%p1769_p10)
}
  0x1a   :  { %s1773_s13 = scalar_lea.vmem %s1896_s12, 512  ;;  %p1778_p12 = scmp.lt.s32.totalorder %s1896_s12, %s1896_s12 }
  0x1b   :  { %p1774_p11 = scmp.ne.s32.totalorder %s1896_s12, %s1773_s13  ;;  %p1779_p13 = scmp.lt.s32.totalorder %s1773_s13, %s1773_s13 }
  0x1d   :  { %p1780_p0 = por %p1779_p13, %p1778_p12 }
  0x1f   :  { %p1781_p1 = pnand %p1780_p0, %p1774_p11 }
  0x21   :  { %1784 = shalt.err (!%p1781_p1)
}
  0x22   :  { %32 = dma.hbm_to_vmem [thread:$0]  %s2171_s2, 512, %s1896_s12, [#allocation4], %s1837_s21, %s1837_s21, %s1838_s22  }
  0x23   :  { %s1839_s14 = smov [#allocation8]   ;;  %s1785_s18 = scalar_lea.hbm %s2174_s5, 512 }
  0x24   :  { %s52_s15 = sshll.u32 %s1839_s14, 4  ;;  %p1786_p2 = scmp.ne.s32.totalorder %s2174_s5, %s1785_s18  ;;  %s53_s15 = int_to_ptr.vmem [resolvable:$true] %s52_s15 }
  0x25   :  { %p1789_p3 = scmp.lt.u32.totalorder %s1785_s18, %s2174_s5 }
  0x27   :  { %p1791_p4 = pnand %p1789_p3, %p1786_p2 }
  0x29   :  { %1794 = shalt.err (!%p1791_p4)
}
  0x2a   :  { %s1795_s25 = scalar_lea.vmem %s53_s15, 512  ;;  %p1800_p6 = scmp.lt.s32.totalorder %s53_s15, %s53_s15 }
  0x2b   :  { %p1796_p5 = scmp.ne.s32.totalorder %s53_s15, %s1795_s25  ;;  %p1801_p7 = scmp.lt.s32.totalorder %s1795_s25, %s1795_s25 }
  0x2d   :  { %p1802_p8 = por %p1801_p7, %p1800_p6 }
  0x2f   :  { %p1803_p9 = pnand %p1802_p8, %p1796_p5 }
  0x31   :  { %1806 = shalt.err (!%p1803_p9)
}
  0x32   :  { %58 = dma.hbm_to_vmem [thread:$0]  %s2174_s5, 512, %s53_s15, [#allocation7], %s1837_s21, %s1837_s21, %s1838_s22  }
  0x33   :  { %1829 = dma.done.wait [#allocation4], 512  }
  0x34   :  { %1830 = vsyncadd [#allocation4], 4294966784 }
  0x35   :  { %1831 = dma.done.wait [#allocation7], 1024  }
  0x36   :  { %1832 = vsyncadd [#allocation7], 4294966272  ;;  %v1840_v0 = vmov 0.0|0.0   ;;  %vm1841_vm0 = vmmov 0   ;;  %v1842_v1 = vmov 0.0   ;;  %v82_v2 = vld [vmem:[%s2170_s1] sm:$0xff] }
  0x37   :  { %1585 = vmatprep.subr.bf16.mxu1 %v1840_v0  ;;  %1464 = vmatprep.mubr.msk.f32.mxu1 %vm1841_vm0, %v1842_v1  ;;  %v83_v3 = vld [vmem:[%s2170_s1 + $0x8] sm:$0xff]  ;;  %v236_v4 = vld [vmem:[#allocation6] sm:$0xff]  ;;  %vm93_vm1 = vcmask 261120   ;;  %v84_v7 = vld [vmem:[%s2170_s1 + $0x10] sm:$0xff] }
  0x38   :  { %v1577_v5 = vpack.c.bf16 %v83_v3, %v82_v2  ;;  %v237_v6 = vld [vmem:[#allocation6 + $0x8] sm:$0xff]  ;;  %v85_v8 = vld [vmem:[%s2170_s1 + $0x18] sm:$0xff]  ;;  %v238_v11 = vld [vmem:[#allocation6 + $0x10] sm:$0xff] }
  0x39   :  { %v1586_v9 = vpack.c.bf16 %v237_v6, %v236_v4  ;;  %v1581_v10 = vpack.c.bf16 %v85_v8, %v84_v7  ;;  %v239_v12 = vld [vmem:[#allocation6 + $0x18] sm:$0xff]  ;;  %v74_v13 = vld [vmem:[%s2169_s0] sm:$0xff]  ;;  %v232_v16 = vld [vmem:[#allocation3 + $0x8] sm:$0xff] }
  0x3a   :  { %1578 = vmatprep.subr.bf16.mxu0 %v1577_v5  ;;  %1444 = vmatprep.mubr.msk.f32.mxu0 %vm93_vm1, %v74_v13  ;;  %v1589_v14 = vpack.c.bf16 %v239_v12, %v238_v11  ;;  %v231_v15 = vld [vmem:[#allocation3] sm:$0xff]  ;;  %v235_v17 = vld [vmem:[%s2169_s0 + $0x38] sm:$0xff]  ;;  %v75_v18 = vld [vmem:[%s2169_s0 + $0x8] sm:$0xff] }
  0x3b   :  { %1587 = vmatpush3.bf16.msra.mxu1 %v1586_v9  ;;  %1580 = vmatpush3.bf16.msra.mxu0 %v1577_v5  ;;  %v1974_v19 = vpack.c.bf16 %v232_v16, %v231_v15  ;;  %v76_v20 = vld [vmem:[%s2169_s0 + $0x10] sm:$0xff]  ;;  %v234_v22 = vld [vmem:[#allocation3 + $0x18] sm:$0xff]  ;;  %v78_v25 = vld [vmem:[%s2169_s0 + $0x20] sm:$0xff] }
  0x3c   :  { %1588 = vmatprep.subr.bf16.mxu1 %v1840_v0  ;;  %1582 = vmatprep.subr.bf16.mxu0 %v1581_v10  ;;  %v233_v21 = vld [vmem:[#allocation3 + $0x10] sm:$0xff]  ;;  %v77_v23 = vld [vmem:[%s2169_s0 + $0x18] sm:$0xff]  ;;  %v79_v26 = vld [vmem:[%s2169_s0 + $0x28] sm:$0xff] }
  0x3d   :  { %v1988_v24 = vpack.c.bf16 %v234_v22, %v233_v21  ;;  %v80_v27 = vld [vmem:[%s2169_s0 + $0x30] sm:$0xff]  ;;  %v1347_v28 = vld [vmem:[%s2175_s6] ss:$0 sm:$0xff]  ;;  %s1844_s6 = smov 32   ;;  %v345_v12 = vld [vmem:[%s2176_s7 + $0x28] sm:$0xff] }
  0x3e   :  { %v1338_v29 = vld [vmem:[%s2172_s3] ss:$0 sm:$0xff]  ;;  %s1843_s3 = smov 64   ;;  %v346_v13 = vld [vmem:[%s2176_s7 + $0x30] sm:$0xff]  ;;  %v347_v15 = vld [vmem:[%s2176_s7 + $0x38] sm:$0xff] }
  0x3f   :  { %1590 = vmatpush3.bf16.msra.mxu1 %v1589_v14  ;;  %1584 = vmatpush3.bf16.msra.mxu0 %v1581_v10  ;;  %v344_v11 = vld [vmem:[%s2176_s7 + $0x20] sm:$0xff]  ;;  %v1595_v16 = vpack.c.bf16 %v347_v15, %v346_v13 }
  0x40   :  { %1597 = vmatprep.subr.bf16.mxu0 %v1840_v0  ;;  %1591 = vmatprep.subr.bf16.mxu1 %v1840_v0  ;;  %v1592_v14 = vpack.c.bf16 %v345_v12, %v344_v11 }
  0x42   :  { %1465 = vmatmul.mubr.msk.f32.vlgmr.msra.gmra.mrb[0].mxu1 %vm93_vm1, %v235_v17  ;;  %1445 = vmatmul.mubr.msk.f32.vlgmr.msra.gmra.mrb[0].mxu0 %vm93_vm1, %v75_v18 }
  0x43   :  { %1599 = vmatpush3.bf16.msra.mxu0 %v1974_v19  ;;  %1447 = vmatprep.mubr.msk.f32.mxu0 %vm93_vm1, %v76_v20 }
  0x44   :  { %1600 = vmatprep.subr.bf16.mxu0 %v1840_v0  ;;  %1475 = vmatprep.mubr.msk.f32.mxu1 %vm1841_vm0, %v1842_v1 }
  0x45   :  { %1593 = vmatpush3.bf16.msra.mxu1 %v1592_v14 }
  0x46   :  { %1448 = vmatmul.mubr.msk.f32.gmra.mrb[2].mxu0 %vm93_vm1, %v77_v23  ;;  %1594 = vmatprep.subr.bf16.mxu1 %v1840_v0 }
  0x47   :  { %1450 = vmatprep.mubr.msk.f32.mxu0 %vm93_vm1, %v78_v25  ;;  %1602 = vmatpush3.bf16.msra.mxu0 %v1988_v24 }
  0x48   :  { %1609 = vmatprep.subr.bf16.mxu0 %v1840_v0 }
  0x49   :  { %1596 = vmatpush3.bf16.msra.mxu1 %v1595_v16 }
  0x4a   :  { %1451 = vmatmul.mubr.msk.f32.gmra.mrb[4].mxu0 %vm93_vm1, %v79_v26  ;;  %1603 = vmatprep.subr.bf16.mxu1 %v1840_v0 }
  0x4b   :  { %1453 = vmatprep.mubr.msk.f32.mxu0 %vm93_vm1, %v80_v27 }
  0x4e   :  { %1454 = vmatmul.mubr.msk.f32.gmra.mrb[6].mxu0 %vm93_vm1, %v235_v17 }
  0x4f   :  { %1486 = vmatprep.mubr.msk.f32.mxu0 %vm1841_vm0, %v1842_v1 }
  0x52   :  { %1487 = vmatmul.mubr.f32.vlgmr.msra.gmra.mrb[8].mxu0 %v1842_v1 }
  0x53   :  { %1611 = vmatpush3.bf16.msra.mxu0 %v1974_v19  ;;  %1508 = vmatprep.mubr.msk.f32.mxu0 %vm1841_vm0, %v1842_v1 }
  0x54   :  { %1612 = vmatprep.subr.bf16.mxu0 %v1840_v0 }
  0x57   :  { %1614 = vmatpush3.bf16.msra.mxu0 %v1988_v24 }
  0x58   :  { %1621 = vmatprep.subr.bf16.mxu0 %v1840_v0 }
 0x115   :  { %v316_v30 = vpop.f32.mrb[0].mxu1  ;;  %v1446_v31 = vpop.f32.mrb[0].mxu0 }
 0x116   :  { %v317_v32 = vadd.f32 %v1347_v28, %v316_v30  ;;  %v2024_v33 = vadd.f32 %v1446_v31, %v1338_v29  ;;  %v184_v34 = vpop.f32.mrb[1].mxu0  ;;  %v1466_v35 = vpop.f32.mrb[1].mxu1 }
 0x117   :  { %v185_v49 = vadd.f32 %v1338_v29, %v184_v34 }
 0x118   :  { %1665 = vtanh.f32 %v317_v32  ;;  %v1349_v54 = vmul.f32 -1.442695, %v317_v32 }
 0x119   :  { %v1449_v36 = vpop.f32.mrb[2].mxu0 }
 0x11a   :  { %v2026_v37 = vadd.f32 %v1449_v36, %v1338_v29  ;;  %v194_v38 = vpop.f32.mrb[3].mxu0 }
 0x11b   :  { %v2028_v39 = vadd.f32 %v1338_v29, %v194_v38 }
 0x11d   :  { %v1452_v40 = vpop.f32.mrb[4].mxu0 }
 0x11e   :  { %v2030_v41 = vadd.f32 %v1452_v40, %v1338_v29  ;;  %v204_v42 = vpop.f32.mrb[5].mxu0 }
 0x11f   :  { %v2032_v43 = vadd.f32 %v1338_v29, %v204_v42 }
 0x121   :  { %v1455_v44 = vpop.f32.mrb[6].mxu0 }
 0x122   :  { %v1666_v45 = vpop.eup %1665  ;;  %v2034_v46 = vadd.f32 %v1455_v44, %v1338_v29  ;;  %v214_v47 = vpop.f32.mrb[7].mxu0 }
 0x123   :  { %329 = vrot.lane.b32.xlu0 %v1666_v45, %s1843_s3  ;;  %v2037_v48 = vadd.f32 %v1338_v29, %v214_v47 }
 0x125   :  { %v500_v50 = vpop.f32.mrb[8].mxu0 }
 0x126   :  { %v504_v51 = vadd.f32 %v500_v50, %v185_v49  ;;  %v1488_v52 = vpop.f32.mrb[9].mxu0 }
 0x128   :  { %1667 = vtanh.f32 %v504_v51  ;;  %v1352_v56 = vmul.f32 -1.442695, %v504_v51 }
 0x129   :  { %1669 = vpow2.f32 %v1349_v54 }
 0x12a   :  { %1671 = vpow2.f32 %v1352_v56 }
 0x132   :  { %v1668_v53 = vpop.eup %1667 }
 0x133   :  { %514 = vrot.lane.b32.xlu0 %v1668_v53, %s1843_s3  ;;  %v1670_v55 = vpop.eup %1669 }
 0x134   :  { %v323_v57 = vadd.f32 1.0, %v1670_v55  ;;  %v1672_v58 = vpop.eup %1671 }
 0x135   :  { %v508_v62 = vadd.f32 1.0, %v1672_v58 }
 0x136   :  { %1673 = vrcp.f32 %v323_v57 }
 0x137   :  { %1675 = vrcp.f32 %v508_v62 }
 0x140   :  { %v1674_v59 = vpop.eup %1673 }
 0x141   :  { %v1676_v63 = vpop.eup %1675  ;;  %v327_v4 = vmul.f32 0.0, %v1674_v59 }
 0x142   :  { %v512_v8 = vmul.f32 0.0, %v1676_v63 }
 0x195   :  { %v330_v60 = vpop.permute.xlu0 %329 }
 0x196   :  { %v332_v61 = vmul.f32 %v1674_v59, %v330_v60 }
 0x198   :  { %334 = vrot.lane.b32.xlu1 %v332_v61, %s1844_s6 }
 0x1a5   :  { %v515_v2 = vpop.permute.xlu0 %514 }
 0x1a6   :  { %v517_v3 = vmul.f32 %v1676_v63, %v515_v2 }
 0x1a8   :  { %519 = vrot.lane.b32.xlu1 %v517_v3, %s1844_s6 }
 0x20a   :  { %v335_v5 = vpop.permute.xlu1 %334 }
 0x20b   :  { %v337_v6 = vadd.f32 %v335_v5, %v327_v4 }
 0x20d   :  { %1677 = vtanh.f32 %v337_v6 }
 0x217   :  { %v1678_v7 = vpop.eup %1677 }
 0x218   :  { %340 = vrot.lane.b32.xlu0 %v1678_v7, %s1843_s3 }
 0x21a   :  { %v520_v9 = vpop.permute.xlu1 %519 }
 0x21b   :  { %v522_v10 = vadd.f32 %v520_v9, %v512_v8 }
 0x21d   :  { %1679 = vtanh.f32 %v522_v10 }
 0x227   :  { %v1680_v17 = vpop.eup %1679 }
 0x228   :  { %525 = vrot.lane.b32.xlu1 %v1680_v17, %s1843_s3 }
 0x28a   :  { %v341_v18 = vpop.permute.xlu0 %340 }
 0x28b   :  { %v343_v20 = vmul.f32 %v1674_v59, %v341_v18 }
 0x28d   :  { %356 = vrot.lane.b32.xlu0 %v343_v20, %s1844_s6 }
 0x29a   :  { %v526_v21 = vpop.permute.xlu1 %525 }
 0x29b   :  { %v528_v22 = vmul.f32 %v1676_v63, %v526_v21 }
 0x29d   :  { %531 = vrot.lane.b32.xlu1 %v528_v22, %s1844_s6 }
 0x2ff   :  { %v357_v23 = vpop.permute.xlu0 %356 }
 0x300   :  { %1476 = vmatmul.mubr.msk.f32.vlgmr.msra.gmra.mrb[2].mxu1 %vm93_vm1, %v357_v23 }
 0x301   :  { %1605 = vmatpush3.bf16.msra.mxu1 %v1974_v19  ;;  %1497 = vmatprep.mubr.msk.f32.mxu1 %vm1841_vm0, %v1842_v1 }
 0x302   :  { %1606 = vmatprep.subr.bf16.mxu1 %v1840_v0 }
 0x305   :  { %1608 = vmatpush3.bf16.msra.mxu1 %v1988_v24 }
 0x306   :  { %1615 = vmatprep.subr.bf16.mxu1 %v1840_v0 }
 0x30f   :  { %v532_v25 = vpop.permute.xlu1 %531 }
 0x310   :  { %1498 = vmatmul.mubr.msk.f32.vlgmr.msra.gmra.mrb[4].mxu1 %vm93_vm1, %v532_v25 }
 0x311   :  { %1617 = vmatpush3.bf16.msra.mxu1 %v1974_v19  ;;  %1519 = vmatprep.mubr.msk.f32.mxu1 %vm1841_vm0, %v1842_v1 }
 0x312   :  { %1618 = vmatprep.subr.bf16.mxu1 %v1840_v0 }
 0x315   :  { %1620 = vmatpush3.bf16.msra.mxu1 %v1988_v24 }
 0x316   :  { %1627 = vmatprep.subr.bf16.mxu1 %v1840_v0 }
 0x3e3   :  { %v601_v26 = vpop.f32.mrb[4].mxu1 }
 0x3e4   :  { %v605_v27 = vadd.f32 %v601_v26, %v2024_v33  ;;  %v1499_v28 = vpop.f32.mrb[5].mxu1 }
 0x3e6   :  { %1681 = vtanh.f32 %v605_v27  ;;  %v1354_v30 = vmul.f32 -1.442695, %v605_v27 }
 0x3e8   :  { %1683 = vpow2.f32 %v1354_v30 }
 0x3f0   :  { %v1682_v29 = vpop.eup %1681 }
 0x3f1   :  { %615 = vrot.lane.b32.xlu0 %v1682_v29, %s1843_s3 }
 0x3f2   :  { %v1684_v31 = vpop.eup %1683 }
 0x3f3   :  { %v609_v32 = vadd.f32 1.0, %v1684_v31 }
 0x3f5   :  { %1685 = vrcp.f32 %v609_v32 }
 0x3ff   :  { %v1686_v34 = vpop.eup %1685 }
 0x400   :  { %v613_v38 = vmul.f32 %v1686_v34, %v522_v10 }
 0x463   :  { %v616_v35 = vpop.permute.xlu0 %615 }
 0x464   :  { %v618_v36 = vmul.f32 %v1686_v34, %v616_v35 }
 0x466   :  { %620 = vrot.lane.b32.xlu1 %v618_v36, %s1844_s6 }
 0x4d8   :  { %v621_v40 = vpop.permute.xlu1 %620 }
 0x4d9   :  { %v623_v42 = vadd.f32 %v621_v40, %v613_v38 }
 0x4db   :  { %1687 = vtanh.f32 %v623_v42 }
 0x4e5   :  { %v1688_v33 = vpop.eup %1687 }
 0x4e6   :  { %626 = vrot.lane.b32.xlu0 %v1688_v33, %s1843_s3 }
 0x558   :  { %v627_v44 = vpop.permute.xlu0 %626 }
 0x559   :  { %v629_v45 = vmul.f32 %v1686_v34, %v627_v44 }
 0x55b   :  { %632 = vrot.lane.b32.xlu1 %v629_v45, %s1844_s6 }
 0x5cd   :  { %v633_v47 = vpop.permute.xlu1 %632 }
 0x5ce   :  { %1509 = vmatmul.mubr.msk.f32.vlgmr.msra.gmra.mrb[10].mxu0 %vm93_vm1, %v633_v47 }
 0x5cf   :  { %1623 = vmatpush3.bf16.msra.mxu0 %v1974_v19  ;;  %1530 = vmatprep.mubr.msk.f32.mxu0 %vm1841_vm0, %v1842_v1 }
 0x5d0   :  { %1624 = vmatprep.subr.bf16.mxu0 %v1840_v0 }
 0x5d3   :  { %1626 = vmatpush3.bf16.msra.mxu0 %v1988_v24 }
 0x5d4   :  { %1633 = vmatprep.subr.bf16.mxu0 %v1840_v0 }
 0x6a1   :  { %v702_v49 = vpop.f32.mrb[10].mxu0 }
 0x6a2   :  { %v706_v50 = vadd.f32 %v702_v49, %v2028_v39  ;;  %v1510_v51 = vpop.f32.mrb[11].mxu0 }
 0x6a4   :  { %1689 = vtanh.f32 %v706_v50  ;;  %v1356_v53 = vmul.f32 -1.442695, %v706_v50 }
 0x6a6   :  { %1691 = vpow2.f32 %v1356_v53 }
 0x6ae   :  { %v1690_v52 = vpop.eup %1689 }
 0x6af   :  { %716 = vrot.lane.b32.xlu0 %v1690_v52, %s1843_s3 }
 0x6b0   :  { %v1692_v54 = vpop.eup %1691 }
 0x6b1   :  { %v710_v55 = vadd.f32 1.0, %v1692_v54 }
 0x6b3   :  { %1693 = vrcp.f32 %v710_v55 }
 0x6bd   :  { %v1694_v56 = vpop.eup %1693 }
 0x6be   :  { %v714_v59 = vmul.f32 %v1694_v56, %v623_v42 }
 0x721   :  { %v717_v57 = vpop.permute.xlu0 %716 }
 0x722   :  { %v719_v58 = vmul.f32 %v1694_v56, %v717_v57 }
 0x724   :  { %721 = vrot.lane.b32.xlu1 %v719_v58, %s1844_s6 }
 0x796   :  { %v722_v60 = vpop.permute.xlu1 %721 }
 0x797   :  { %v724_v61 = vadd.f32 %v722_v60, %v714_v59 }
 0x799   :  { %1695 = vtanh.f32 %v724_v61 }
 0x7a3   :  { %v1696_v39 = vpop.eup %1695 }
 0x7a4   :  { %727 = vrot.lane.b32.xlu0 %v1696_v39, %s1843_s3 }
 0x816   :  { %v728_v62 = vpop.permute.xlu0 %727 }
 0x817   :  { %v730_v63 = vmul.f32 %v1694_v56, %v728_v62 }
 0x819   :  { %733 = vrot.lane.b32.xlu1 %v730_v63, %s1844_s6 }
 0x88b   :  { %v734_v2 = vpop.permute.xlu1 %733 }
 0x88c   :  { %1520 = vmatmul.mubr.msk.f32.vlgmr.msra.gmra.mrb[6].mxu1 %vm93_vm1, %v734_v2 }
 0x88d   :  { %1629 = vmatpush3.bf16.msra.mxu1 %v1974_v19  ;;  %1541 = vmatprep.mubr.msk.f32.mxu1 %vm1841_vm0, %v1842_v1 }
 0x88e   :  { %1630 = vmatprep.subr.bf16.mxu1 %v1840_v0 }
 0x891   :  { %1632 = vmatpush3.bf16.msra.mxu1 %v1988_v24 }
 0x892   :  { %1639 = vmatprep.subr.bf16.mxu1 %v1840_v0 }
 0x95f   :  { %v803_v3 = vpop.f32.mrb[6].mxu1 }
 0x960   :  { %v807_v4 = vadd.f32 %v803_v3, %v2026_v37  ;;  %v1521_v5 = vpop.f32.mrb[7].mxu1 }
 0x962   :  { %1697 = vtanh.f32 %v807_v4  ;;  %v1358_v7 = vmul.f32 -1.442695, %v807_v4 }
 0x964   :  { %1699 = vpow2.f32 %v1358_v7 }
 0x96c   :  { %v1698_v6 = vpop.eup %1697 }
 0x96d   :  { %817 = vrot.lane.b32.xlu0 %v1698_v6, %s1843_s3 }
 0x96e   :  { %v1700_v8 = vpop.eup %1699 }
 0x96f   :  { %v811_v9 = vadd.f32 1.0, %v1700_v8 }
 0x971   :  { %1701 = vrcp.f32 %v811_v9 }
 0x97b   :  { %v1702_v10 = vpop.eup %1701 }
 0x97c   :  { %v815_v13 = vmul.f32 %v1702_v10, %v724_v61 }
 0x9df   :  { %v818_v11 = vpop.permute.xlu0 %817 }
 0x9e0   :  { %v820_v12 = vmul.f32 %v1702_v10, %v818_v11 }
 0x9e2   :  { %822 = vrot.lane.b32.xlu1 %v820_v12, %s1844_s6 }
 0xa54   :  { %v823_v14 = vpop.permute.xlu1 %822 }
 0xa55   :  { %v825_v15 = vadd.f32 %v823_v14, %v815_v13 }
 0xa57   :  { %1703 = vtanh.f32 %v825_v15 }
 0xa61   :  { %v1704_v37 = vpop.eup %1703 }
 0xa62   :  { %828 = vrot.lane.b32.xlu0 %v1704_v37, %s1843_s3 }
 0xad4   :  { %v829_v16 = vpop.permute.xlu0 %828 }
 0xad5   :  { %v831_v17 = vmul.f32 %v1702_v10, %v829_v16 }
 0xad7   :  { %834 = vrot.lane.b32.xlu1 %v831_v17, %s1844_s6 }
 0xb49   :  { %v835_v18 = vpop.permute.xlu1 %834 }
 0xb4a   :  { %1531 = vmatmul.mubr.msk.f32.vlgmr.msra.gmra.mrb[12].mxu0 %vm93_vm1, %v835_v18 }
 0xb4b   :  { %1635 = vmatpush3.bf16.msra.mxu0 %v1974_v19  ;;  %1552 = vmatprep.mubr.msk.f32.mxu0 %vm1841_vm0, %v1842_v1 }
 0xb4c   :  { %1636 = vmatprep.subr.bf16.mxu0 %v1840_v0 }
 0xb4f   :  { %1638 = vmatpush3.bf16.msra.mxu0 %v1988_v24 }
 0xc1d   :  { %v904_v20 = vpop.f32.mrb[12].mxu0 }
 0xc1e   :  { %v908_v21 = vadd.f32 %v904_v20, %v2032_v43  ;;  %v1532_v22 = vpop.f32.mrb[13].mxu0 }
 0xc1f   :  { %v1237_v22 = vld [vmem:[%s2176_s7 + $0x8] sm:$0xff] }
 0xc20   :  { %1705 = vtanh.f32 %v908_v21  ;;  %v1360_v25 = vmul.f32 -1.442695, %v908_v21 }
 0xc22   :  { %1707 = vpow2.f32 %v1360_v25 }
 0xc2a   :  { %v1706_v23 = vpop.eup %1705 }
 0xc2b   :  { %918 = vrot.lane.b32.xlu0 %v1706_v23, %s1843_s3  ;;  %v1238_v23 = vld [vmem:[%s2176_s7 + $0x10] sm:$0xff] }
 0xc2c   :  { %v1708_v26 = vpop.eup %1707 }
 0xc2d   :  { %v912_v27 = vadd.f32 1.0, %v1708_v26  ;;  %v1239_v26 = vld [vmem:[%s2176_s7 + $0x18] sm:$0xff] }
 0xc2f   :  { %1709 = vrcp.f32 %v912_v27  ;;  %v1649_v27 = vpack.c.bf16 %v1239_v26, %v1238_v23 }
 0xc39   :  { %v1710_v28 = vpop.eup %1709 }
 0xc3a   :  { %v916_v31 = vmul.f32 %v1710_v28, %v825_v15 }
 0xc9d   :  { %v919_v29 = vpop.permute.xlu0 %918 }
 0xc9e   :  { %v921_v30 = vmul.f32 %v1710_v28, %v919_v29 }
 0xca0   :  { %923 = vrot.lane.b32.xlu1 %v921_v30, %s1844_s6 }
 0xd12   :  { %v924_v32 = vpop.permute.xlu1 %923 }
 0xd13   :  { %v926_v34 = vadd.f32 %v924_v32, %v916_v31  ;;  %v1350_v32 = vld [vmem:[%s2177_s8] ss:$0 sm:$0xff] }
 0xd15   :  { %1711 = vtanh.f32 %v926_v34 }
 0xd1f   :  { %v1712_v43 = vpop.eup %1711 }
 0xd20   :  { %929 = vrot.lane.b32.xlu0 %v1712_v43, %s1843_s3 }
 0xd92   :  { %v930_v35 = vpop.permute.xlu0 %929 }
 0xd93   :  { %v932_v36 = vmul.f32 %v1710_v28, %v930_v35 }
 0xd95   :  { %935 = vrot.lane.b32.xlu1 %v932_v36, %s1844_s6 }
 0xe07   :  { %v936_v38 = vpop.permute.xlu1 %935 }
 0xe08   :  { %1542 = vmatmul.mubr.msk.f32.vlgmr.msra.gmra.mrb[8].mxu1 %vm93_vm1, %v936_v38 }
 0xe09   :  { %1641 = vmatpush3.bf16.msra.mxu1 %v1974_v19  ;;  %1563 = vmatprep.mubr.msk.f32.mxu1 %vm1841_vm0, %v1842_v1 }
 0xe0a   :  { %1642 = vmatprep.subr.bf16.mxu1 %v1840_v0 }
 0xe0d   :  { %1644 = vmatpush3.bf16.msra.mxu1 %v1988_v24 }
 0xe0e   :  { %1645 = vmatprep.subr.bf16.mxu1 %v1840_v0 }
 0xedb   :  { %v1005_v40 = vpop.f32.mrb[8].mxu1 }
 0xedc   :  { %v1009_v42 = vadd.f32 %v1005_v40, %v2030_v41  ;;  %v1543_v33 = vpop.f32.mrb[9].mxu1 }
 0xede   :  { %1713 = vtanh.f32 %v1009_v42  ;;  %v1362_v45 = vmul.f32 -1.442695, %v1009_v42 }
 0xee0   :  { %1715 = vpow2.f32 %v1362_v45 }
 0xee8   :  { %v1714_v44 = vpop.eup %1713 }
 0xee9   :  { %1019 = vrot.lane.b32.xlu0 %v1714_v44, %s1843_s3 }
 0xeea   :  { %v1716_v19 = vpop.eup %1715 }
 0xeeb   :  { %v1013_v47 = vadd.f32 1.0, %v1716_v19 }
 0xeed   :  { %1717 = vrcp.f32 %v1013_v47 }
 0xef7   :  { %v1718_v49 = vpop.eup %1717 }
 0xef8   :  { %v1017_v24 = vmul.f32 %v1718_v49, %v926_v34 }
 0xf5b   :  { %v1020_v50 = vpop.permute.xlu0 %1019 }
 0xf5c   :  { %v1022_v51 = vmul.f32 %v1718_v49, %v1020_v50 }
 0xf5e   :  { %1024 = vrot.lane.b32.xlu1 %v1022_v51, %s1844_s6 }
 0xfd0   :  { %v1025_v52 = vpop.permute.xlu1 %1024 }
 0xfd1   :  { %v1027_v53 = vadd.f32 %v1025_v52, %v1017_v24 }
 0xfd3   :  { %1719 = vtanh.f32 %v1027_v53 }
 0xfdd   :  { %v1720_v41 = vpop.eup %1719 }
 0xfde   :  { %1030 = vrot.lane.b32.xlu0 %v1720_v41, %s1843_s3 }
0x1050   :  { %v1031_v54 = vpop.permute.xlu0 %1030 }
0x1051   :  { %v1033_v55 = vmul.f32 %v1718_v49, %v1031_v54 }
0x1053   :  { %1036 = vrot.lane.b32.xlu1 %v1033_v55, %s1844_s6 }
0x10c5   :  { %v1037_v56 = vpop.permute.xlu1 %1036 }
0x10c6   :  { %1553 = vmatmul.mubr.msk.f32.vlgmr.msra.gmra.mrb[14].mxu0 %vm93_vm1, %v1037_v56 }
0x1199   :  { %v1106_v57 = vpop.f32.mrb[14].mxu0 }
0x119a   :  { %v1110_v58 = vadd.f32 %v1106_v57, %v2037_v48  ;;  %v1554_v59 = vpop.f32.mrb[15].mxu0 }
0x119c   :  { %1721 = vtanh.f32 %v1110_v58  ;;  %v1364_v61 = vmul.f32 -1.442695, %v1110_v58 }
0x119e   :  { %1723 = vpow2.f32 %v1364_v61 }
0x11a6   :  { %v1722_v60 = vpop.eup %1721 }
0x11a7   :  { %1120 = vrot.lane.b32.xlu0 %v1722_v60, %s1843_s3 }
0x11a8   :  { %v1724_v39 = vpop.eup %1723 }
0x11a9   :  { %v1114_v62 = vadd.f32 1.0, %v1724_v39 }
0x11ab   :  { %1725 = vrcp.f32 %v1114_v62 }
0x11b5   :  { %v1726_v63 = vpop.eup %1725 }
0x11b6   :  { %v1118_v4 = vmul.f32 %v1726_v63, %v1027_v53 }
0x1219   :  { %v1121_v2 = vpop.permute.xlu0 %1120 }
0x121a   :  { %v1123_v3 = vmul.f32 %v1726_v63, %v1121_v2 }
0x121c   :  { %1125 = vrot.lane.b32.xlu1 %v1123_v3, %s1844_s6 }
0x128e   :  { %v1126_v5 = vpop.permute.xlu1 %1125 }
0x128f   :  { %v1128_v6 = vadd.f32 %v1126_v5, %v1118_v4 }
0x1291   :  { %1727 = vtanh.f32 %v1128_v6 }
0x129b   :  { %v1728_v48 = vpop.eup %1727 }
0x129c   :  { %1131 = vrot.lane.b32.xlu0 %v1728_v48, %s1843_s3 }
0x130e   :  { %v1132_v7 = vpop.permute.xlu0 %1131 }
0x130f   :  { %v1134_v8 = vmul.f32 %v1726_v63, %v1132_v7 }
0x1311   :  { %1137 = vrot.lane.b32.xlu1 %v1134_v8, %s1844_s6 }
0x1383   :  { %v1138_v9 = vpop.permute.xlu1 %1137 }
0x1384   :  { %1564 = vmatmul.mubr.msk.f32.vlgmr.msra.gmra.mrb[10].mxu1 %vm93_vm1, %v1138_v9 }
0x1385   :  { %1574 = vmatprep.mubr.msk.f32.mxu1 %vm1841_vm0, %v1842_v1 }
0x1457   :  { %v1207_v10 = vpop.f32.mrb[10].mxu1 }
0x1458   :  { %v1211_v11 = vadd.f32 %v1207_v10, %v2034_v46  ;;  %v1565_v12 = vpop.f32.mrb[11].mxu1  ;;  %v1236_v46 = vld [vmem:[%s2176_s7] sm:$0xff]  ;;  %s1845_s7 = smov [#allocation9]  }
0x1459   :  { %v1646_v25 = vpack.c.bf16 %v1237_v22, %v1236_v46  ;;  %s1328_s23 = sshll.u32 %s1845_s7, 4  ;;  %s1329_s23 = int_to_ptr.vmem [resolvable:$true] %s1328_s23 }
0x145a   :  { %1729 = vtanh.f32 %v1211_v11  ;;  %v1366_v14 = vmul.f32 -1.442695, %v1211_v11  ;;  %s1807_s24 = scalar_lea.vmem %s1329_s23, 128  ;;  %p1812_p11 = scmp.lt.s32.totalorder %s1329_s23, %s1329_s23 }
0x145b   :  { %1647 = vmatpush3.bf16.msra.mxu1 %v1646_v25  ;;  %p1808_p10 = scmp.ne.s32.totalorder %s1329_s23, %s1807_s24  ;;  %p1813_p12 = scmp.lt.s32.totalorder %s1807_s24, %s1807_s24 }
0x145c   :  { %1731 = vpow2.f32 %v1366_v14  ;;  %1648 = vmatprep.subr.bf16.mxu1 %v1840_v0 }
0x145d   :  { %p1814_p13 = por %p1813_p12, %p1812_p11 }
0x145f   :  { %1650 = vmatpush3.bf16.msra.mxu1 %v1649_v27  ;;  %p1815_p0 = pnand %p1814_p13, %p1808_p10 }
0x1464   :  { %v1730_v13 = vpop.eup %1729 }
0x1465   :  { %1221 = vrot.lane.b32.xlu0 %v1730_v13, %s1843_s3 }
0x1466   :  { %v1732_v15 = vpop.eup %1731 }
0x1467   :  { %v1215_v37 = vadd.f32 1.0, %v1732_v15 }
0x1469   :  { %1733 = vrcp.f32 %v1215_v37 }
0x1473   :  { %v1734_v16 = vpop.eup %1733 }
0x1474   :  { %v1219_v20 = vmul.f32 %v1734_v16, %v1128_v6 }
0x14d7   :  { %v1222_v17 = vpop.permute.xlu0 %1221 }
0x14d8   :  { %v1224_v18 = vmul.f32 %v1734_v16, %v1222_v17 }
0x14da   :  { %1226 = vrot.lane.b32.xlu1 %v1224_v18, %s1844_s6 }
0x154c   :  { %v1227_v1 = vpop.permute.xlu1 %1226 }
0x154d   :  { %v1229_v21 = vadd.f32 %v1227_v1, %v1219_v20 }
0x154f   :  { %1735 = vtanh.f32 %v1229_v21 }
0x1559   :  { %v1736_v28 = vpop.eup %1735 }
0x155a   :  { %1232 = vrot.lane.b32.xlu0 %v1736_v28, %s1843_s3 }
0x15cc   :  { %v1233_v29 = vpop.permute.xlu0 %1232 }
0x15cd   :  { %v1235_v30 = vmul.f32 %v1734_v16, %v1233_v29 }
0x15cf   :  { %1241 = vrot.lane.b32.xlu1 %v1235_v30, %s1844_s6 }
0x1641   :  { %v1242_v31 = vpop.permute.xlu1 %1241 }
0x1642   :  { %1575 = vmatmul.mubr.msk.f32.vlgmr.msra.gmra.mrb[2].mxu1 %vm93_vm1, %v1242_v31 }
0x1715   :  { %v1311_v34 = vpop.f32.mrb[2].mxu1 }
0x1716   :  { %v1651_v43 = vadd.f32 %v1350_v32, %v1311_v34  ;;  %v1576_v35 = vpop.f32.mrb[3].mxu1 }
0x1718   :  { %v1368_v36 = vmul.f32 -1.442695, %v1651_v43 }
0x171a   :  { %1737 = vpow2.f32 %v1368_v36 }
0x1724   :  { %v1738_v0 = vpop.eup %1737 }
0x1725   :  { %v1318_v38 = vadd.f32 1.0, %v1738_v0 }
0x1727   :  { %1739 = vrcp.f32 %v1318_v38 }
0x1731   :  { %v1740_v40 = vpop.eup %1739 }
0x1732   :  { %1321 = vst [vmem:[#allocation9] sm:$0xff] %v1740_v40 }
0x1733   :  { %1818 = shalt.err (!%p1815_p0)
}
0x1734   :  { %s1819_s2 = scalar_lea.hbm %s2178_s9, 128 }
0x1735   :  { %p1820_p1 = scmp.ne.s32.totalorder %s2178_s9, %s1819_s2  ;;  %p1823_p2 = scmp.lt.u32.totalorder %s1819_s2, %s2178_s9 }
0x1737   :  { %p1825_p3 = pnand %p1823_p2, %p1820_p1 }
0x1739   :  { %1828 = shalt.err (!%p1825_p3)
}
0x173a   :  { %1331 = dma.vmem_to_hbm [thread:$0]  %s1329_s23, 128, %s2178_s9, [#allocation5]  }
0x173b   :  { %1833 = dma.done.wait [#allocation5], 128  }
0x173c   :  { %1834 = vsyncadd [#allocation5], 4294967168 }
0x173d   :  { %1335 = vsyncpa [#allocation4], 1 }
0x173e   :  { %1336 = vsyncpa [#allocation7], 1 }
0x173f   :  { %1337 = vsyncpa [#allocation5], 1 }

</bundles_post_ra>
